<compile_context>
chip_gen: v7x
topology: tpu7x:2x2x1
jax: 0.10.0
libtpu: 0.0.40
codegen_flags: <defaults>
</compile_context>

<pallas_src>
import functools

import jax
import jax.numpy as jnp
from jax import lax
from jax.experimental import pallas as pl
from jax.experimental.pallas import tpu as pltpu


def _bert_intermediate_kernel(x_ref, w_ref, b_ref, o_ref, *, approximate):
    """One (tm, tn) output tile: y = x @ W + b, then GELU."""
    # x_ref: (tm, H); w_ref: (H, tn) -- canonical MXU stationary layout.
    acc = jnp.dot(x_ref[...], w_ref[...], preferred_element_type=jnp.float32)
    y = acc + b_ref[...].astype(jnp.float32)
    if approximate:
        # tanh-approx GELU: tanh runs on the EUP (its own VLIW slot) and hides
        # under the MXU.  Only use when the model config allows 'gelu_new'.
        c = jnp.float32(0.7978845608028654)   # sqrt(2/pi)
        g = 0.5 * y * (1.0 + jnp.tanh(c * (y + jnp.float32(0.044715) * y * y * y)))
    else:
        # Exact erf GELU (HF 'gelu' default) -- matches the PyTorch module.
        g = 0.5 * y * (1.0 + lax.erf(y * jnp.float32(0.7071067811865476)))
    o_ref[...] = g.astype(o_ref.dtype)


def _pick_tile(dim, target, multiple):
    """Largest divisor of `dim` that is <= target and a multiple of `multiple`."""
    t = min(int(target), dim)
    for cand in range(t, multiple - 1, -1):
        if dim % cand == 0 and cand % multiple == 0:
            return cand
    return dim  # only reachable if dim is not a multiple of `multiple`


def _round_up(x, m):
    return -(-x // m) * m


def prepare_bert_intermediate_params(weight, bias, param_dtype=None):
    """One-time parameter prep (layout + optional dtype).

    weight: PyTorch nn.Linear layout (intermediate, hidden).
    Returns (w_hi, bias) with w_hi in (hidden, intermediate) layout.
    Call this once at parameter-load time, NOT per forward call.
    """
    w_hi = jnp.asarray(weight).T
    b = jnp.asarray(bias)
    if param_dtype is not None:
        w_hi = w_hi.astype(param_dtype)
    return w_hi, b


def bert_intermediate(hidden_states, w_hi, bias, *, tm=512, tn=512,
                      compute_dtype=None, out_dtype=None,
                      approximate_gelu=False):
    """BertIntermediate forward: GELU(hidden_states @ W^T + b).

    hidden_states: (B, S, H)
    w_hi:          (H, I) pre-transposed weight (prepare_bert_intermediate_params)
    bias:          (I,)
    tm / tn are tile-size *targets* (adjusted to legal divisors).
    compute_dtype optionally casts the matmul operands (prefer storing bf16
    params/activations upstream instead of per-call casts); accumulation and
    the bias/GELU epilogue always run in float32.
    """
    B, S, H = hidden_states.shape
    Hw, I = w_hi.shape
    assert Hw == H, f"weight hidden dim {Hw} != activation hidden dim {H}"
    M = B * S

    out_dtype = jnp.dtype(out_dtype) if out_dtype is not None else hidden_states.dtype
    x = hidden_states.reshape(M, H)
    w = w_hi
    if compute_dtype is not None:
        cdt = jnp.dtype(compute_dtype)
    else:
        cdt = jnp.promote_types(x.dtype, w.dtype)
    if x.dtype != cdt:
        x = x.astype(cdt)
    if w.dtype != cdt:
        w = w.astype(cdt)
    b2 = bias.reshape(1, I).astype(jnp.float32)

    in_itemsize = cdt.itemsize
    out_itemsize = jnp.dtype(out_dtype).itemsize

    # Pad M to the sublane multiple and I to the lane multiple so every block
    # shape is legal and we never fall back to a full-dim (tm = M) tile.
    sub = 8 * max(1, 4 // in_itemsize)       # 8 (f32), 16 (bf16), 32 (int8)
    M_pad = _round_up(M, sub)
    I_pad = _round_up(I, 128)
    if M_pad != M:
        x = jnp.pad(x, ((0, M_pad - M), (0, 0)))
    if I_pad != I:
        w = jnp.pad(w, ((0, 0), (0, I_pad - I)))
        b2 = jnp.pad(b2, ((0, 0), (0, I_pad - I)))

    tm = _pick_tile(M_pad, tm, sub)
    tn = _pick_tile(I_pad, tn, 128)
    gm, gn = M_pad // tm, I_pad // tn

    # Grid orientation: pick whichever streams fewer HBM bytes.
    #   A (i outer, j inner): x tile resident, W re-streamed gm times.
    #   B (j outer, i inner): W tile resident, x re-streamed gn times.
    bytes_x = M_pad * H * in_itemsize
    bytes_w = I_pad * H * in_itemsize
    bytes_out = M_pad * I_pad * out_itemsize
    traffic_a = bytes_x + gm * bytes_w
    traffic_b = bytes_w + gn * bytes_x
    if traffic_b < traffic_a:
        grid = (gn, gm)
        x_map = lambda j, i: (i, 0)
        w_map = lambda j, i: (0, j)
        o_map = lambda j, i: (i, j)
    else:
        grid = (gm, gn)
        x_map = lambda i, j: (i, 0)
        w_map = lambda i, j: (0, j)
        o_map = lambda i, j: (i, j)

    # VMEM budget: double-buffered input/output tiles plus the in-kernel f32
    # accumulator / GELU temporaries (~3x tm*tn*4), with headroom.
    tile_bytes = (2 * ((tm * H + H * tn) * in_itemsize + tn * 4
                       + tm * tn * out_itemsize)
                  + 3 * tm * tn * 4)
    vmem_limit = int(min(max(tile_bytes + (4 << 20), 32 << 20), 48 << 20))

    cost = pl.CostEstimate(
        flops=2 * M_pad * H * I_pad,
        transcendentals=M_pad * I_pad,
        bytes_accessed=min(traffic_a, traffic_b) + I_pad * 4 + bytes_out,
    )

    kernel = functools.partial(_bert_intermediate_kernel,
                               approximate=approximate_gelu)

    out = pl.pallas_call(
        kernel,
        out_shape=jax.ShapeDtypeStruct((M_pad, I_pad), out_dtype),
        grid_spec=pltpu.PrefetchScalarGridSpec(
            num_scalar_prefetch=0,
            grid=grid,
            in_specs=[
                pl.BlockSpec((tm, H), x_map),    # activation tile (full H)
                pl.BlockSpec((H, tn), w_map),    # weight tile, (K, N) layout
                pl.BlockSpec((1, tn), w_map),    # bias tile
            ],
            out_specs=pl.BlockSpec((tm, tn), o_map),
        ),
        compiler_params=pltpu.CompilerParams(
            dimension_semantics=("parallel", "parallel"),
            vmem_limit_bytes=vmem_limit,
        ),
        cost_estimate=cost,
    )(x, w, b2)

    if M_pad != M or I_pad != I:
        out = out[:M, :I]
    return out.reshape(B, S, I)


def _reference(hidden_states, weight_oi, bias, approximate=False):
    y = jnp.einsum("bsh,ih->bsi", hidden_states.astype(jnp.float32),
                   weight_oi.astype(jnp.float32)) + bias.astype(jnp.float32)
    if approximate:
        c = 0.7978845608028654
        return 0.5 * y * (1.0 + jnp.tanh(c * (y + 0.044715 * y ** 3)))
    return 0.5 * y * (1.0 + lax.erf(y * 0.7071067811865476))


if __name__ == "__main__":
    # Small BERT-ish config: hidden_size=128, intermediate_size=512.
    batch, seq, hidden, intermediate = 2, 8, 128, 512

    key = jax.random.PRNGKey(0)
    k_x, k_w, k_b = jax.random.split(key, 3)

    hidden_states = jax.random.normal(k_x, (batch, seq, hidden), dtype=jnp.float32)
    # PyTorch Linear layout: weight (out, in), bias (out,).
    weight = jax.random.normal(k_w, (intermediate, hidden), dtype=jnp.float32) * 0.02
    bias = jax.random.normal(k_b, (intermediate,), dtype=jnp.float32) * 0.02

    # One-time parameter prep (layout only; dtype kept f32 here).
    w_hi, b = prepare_bert_intermediate_params(weight, bias)

    ref = _reference(hidden_states, weight, bias)

    # 1) Default tiling (single fused tile at this small size), exact GELU.
    out = jax.block_until_ready(bert_intermediate(hidden_states, w_hi, b))
    assert out.shape == (batch, seq, intermediate)
    assert jnp.allclose(out, ref, atol=1e-4, rtol=1e-4), "mismatch vs reference (f32)"

    # 2) Small explicit tiles: exercises the 2-D grid and the adaptive
    #    W-resident (x re-streamed) grid orientation.
    out_tiled = jax.block_until_ready(
        bert_intermediate(hidden_states, w_hi, b, tm=8, tn=128))
    assert jnp.allclose(out_tiled, ref, atol=1e-4, rtol=1e-4), "mismatch (tiled)"

    # 3) Ragged shapes: M=7 rows and I=500 cols (exercises zero-pad + slice).
    hs_r = jax.random.normal(k_x, (1, 7, hidden), dtype=jnp.float32)
    w_r = jax.random.normal(k_w, (500, hidden), dtype=jnp.float32) * 0.02
    b_r = jax.random.normal(k_b, (500,), dtype=jnp.float32) * 0.02
    w_r_hi, b_r_p = prepare_bert_intermediate_params(w_r, b_r)
    out_r = jax.block_until_ready(bert_intermediate(hs_r, w_r_hi, b_r_p))
    ref_r = _reference(hs_r, w_r, b_r)
    assert out_r.shape == (1, 7, 500)
    assert jnp.allclose(out_r, ref_r, atol=1e-4, rtol=1e-4), "mismatch (ragged)"

    # 4) bf16 operands fed directly (store bf16 params upstream, no per-call
    #    cast) with bf16 output and tanh-approx GELU -- the v5e/v6e/v7x fast
    #    path.  Compared against the tanh reference with bf16 tolerance.
    hs_bf16 = hidden_states.astype(jnp.bfloat16)
    w_hi_bf16, b_bf16 = prepare_bert_intermediate_params(
        weight, bias, param_dtype=jnp.bfloat16)
    out_bf16 = jax.block_until_ready(
        bert_intermediate(hs_bf16, w_hi_bf16, b_bf16,
                          out_dtype=jnp.bfloat16, approximate_gelu=True))
    ref_tanh = _reference(hidden_states, weight, bias, approximate=True)
    assert out_bf16.dtype == jnp.bfloat16
    assert jnp.allclose(out_bf16.astype(jnp.float32), ref_tanh,
                        atol=5e-2, rtol=5e-2), "mismatch (bf16/tanh)"

    print("KERNEL_OK")
</pallas_src>

<mosaic_0001>
module attributes {stable_mosaic.version = 11 : i64} {
  func.func @_bert_intermediate_kernel(%arg0: i32, %arg1: i32, %arg2: memref<16x128xf32, #tpu.memory_space<vmem>>, %arg3: memref<128x512xf32, #tpu.memory_space<vmem>>, %arg4: memref<1x512xf32, #tpu.memory_space<vmem>>, %arg5: memref<16x512xf32, #tpu.memory_space<vmem>>) attributes {dimension_semantics = [#tpu.dimension_semantics<parallel>, #tpu.dimension_semantics<parallel>], iteration_bounds = array<i64: 1, 1>, scalar_prefetch = 0 : i64, scratch_operands = 0 : i64, tpu.core_type = #tpu.core_type<tc>, window_params = [{transform_indices = @transform_0, window_bounds = array<i64: 16, 128>}, {transform_indices = @transform_1, window_bounds = array<i64: 128, 512>}, {transform_indices = @transform_2, window_bounds = array<i64: 1, 512>}, {transform_indices = @transform_3, window_bounds = array<i64: 16, 512>}]} {
    %c0 = arith.constant 0 : index
    %c0_0 = arith.constant 0 : index
    %0 = vector.load %arg2[%c0, %c0_0] : memref<16x128xf32, #tpu.memory_space<vmem>>, vector<16x128xf32>
    %c0_1 = arith.constant 0 : index
    %c0_2 = arith.constant 0 : index
    %1 = vector.load %arg3[%c0_1, %c0_2] : memref<128x512xf32, #tpu.memory_space<vmem>>, vector<128x512xf32>
    %cst = arith.constant dense<0.000000e+00> : vector<16x512xf32>
    %2 = tpu.matmul %0, %1, %cst {dimension_numbers = #tpu.dot_dimension_numbers<[1], [0], [0], [1], [0, 0, 1, 1], [], []>} : vector<16x128xf32>, vector<128x512xf32>, vector<16x512xf32> -> vector<16x512xf32>
    %c0_3 = arith.constant 0 : index
    %c0_4 = arith.constant 0 : index
    %3 = vector.load %arg4[%c0_3, %c0_4] : memref<1x512xf32, #tpu.memory_space<vmem>>, vector<1x512xf32>
    %4 = vector.broadcast %3 : vector<1x512xf32> to vector<16x512xf32>
    %5 = arith.addf %2, %4 : vector<16x512xf32>
    %cst_5 = arith.constant 5.000000e-01 : f32
    %6 = vector.broadcast %cst_5 : f32 to vector<16x512xf32>
    %7 = arith.mulf %6, %5 : vector<16x512xf32>
    %cst_6 = arith.constant 0.707106769 : f32
    %8 = vector.broadcast %cst_6 : f32 to vector<16x512xf32>
    %9 = arith.mulf %5, %8 : vector<16x512xf32>
    %10 = math.erf %9 : vector<16x512xf32>
    %cst_7 = arith.constant 1.000000e+00 : f32
    %11 = vector.broadcast %cst_7 : f32 to vector<16x512xf32>
    %12 = arith.addf %11, %10 : vector<16x512xf32>
    %13 = arith.mulf %7, %12 : vector<16x512xf32>
    %c0_8 = arith.constant 0 : index
    %c0_9 = arith.constant 0 : index
    %14 = vector.load %arg5[%c0_8, %c0_9] : memref<16x512xf32, #tpu.memory_space<vmem>>, vector<16x512xf32>
    tpu.vector_store %arg5[%c0_8, %c0_9], %13 {strides = array<i32>} : memref<16x512xf32, #tpu.memory_space<vmem>>, vector<16x512xf32>,
    return
  }
  func.func @transform_0(%arg0: i32, %arg1: i32) -> (i32, i32) {
    %c0_i32 = arith.constant 0 : i32
    %c0_i32_0 = arith.constant 0 : i32
    return %arg0, %c0_i32 : i32, i32
  }
  func.func @transform_1(%arg0: i32, %arg1: i32) -> (i32, i32) {
    %c0_i32 = arith.constant 0 : i32
    %c0_i32_0 = arith.constant 0 : i32
    return %c0_i32, %arg1 : i32, i32
  }
  func.func @transform_2(%arg0: i32, %arg1: i32) -> (i32, i32) {
    %c0_i32 = arith.constant 0 : i32
    %c0_i32_0 = arith.constant 0 : i32
    return %c0_i32, %arg1 : i32, i32
  }
  func.func @transform_3(%arg0: i32, %arg1: i32) -> (i32, i32) {
    %c0_i32 = arith.constant 0 : i32
    return %arg0, %arg1 : i32, i32
  }
}

</mosaic_0001>

<bundles_post_ra>
// kernel: tpu_custom_call.1
= control target key start
LH: loop header
LB: loop body
LE: loop exit
PB: predicated region body
PF: predicated region fallthrough
CT: control target
= control target key end

     0   :  { %8 = vsyncpa [#allocation3], 0  ;;  %s588_s0 = inlined_call_operand.hbm [shape: f32[16,128], index: 0, kind: input, shape index: {}]   ;;  %s589_s1 = inlined_call_operand.hbm [shape: f32[128,512], index: 1, kind: input, shape index: {}]   ;;  %s590_s2 = inlined_call_operand.vmem [shape: f32[1,512], index: 2, kind: input, shape index: {}]   ;;  %s591_s3 = inlined_call_operand.hbm [shape: f32[16,512], index: 3, kind: output, shape index: {}]  }
   0x1   :  { %9 = vsyncpa [#allocation6], 0 }
   0x2   :  { %10 = vsyncpa [#allocation4], 0  ;;  %s511_s12 = smov [#allocation2]   ;;  %s439_s16 = scalar_lea.hbm %s588_s0, 256 }
   0x3   :  { %s16_s13 = sshll.u32 %s511_s12, 4  ;;  %p440_p0 = scmp.ne.s32.totalorder %s588_s0, %s439_s16  ;;  %s17_s13 = int_to_ptr.vmem [resolvable:$true] %s16_s13 }
   0x4   :  { %p443_p1 = scmp.lt.u32.totalorder %s439_s16, %s588_s0 }
   0x6   :  { %p445_p2 = pnand %p443_p1, %p440_p0 }
   0x8   :  { %448 = shalt.err (!%p445_p2)
}
   0x9   :  { %s449_s21 = scalar_lea.vmem %s17_s13, 256  ;;  %p454_p4 = scmp.lt.s32.totalorder %s17_s13, %s17_s13 }
   0xa   :  { %p450_p3 = scmp.ne.s32.totalorder %s17_s13, %s449_s21  ;;  %p455_p5 = scmp.lt.s32.totalorder %s449_s21, %s449_s21 }
   0xc   :  { %p456_p6 = por %p455_p5, %p454_p4 }
   0xe   :  { %p457_p7 = pnand %p456_p6, %p450_p3 }
  0x10   :  { %460 = shalt.err (!%p457_p7)
}
  0x11   :  { %s512_s22 = smov 128   ;;  %s513_s23 = smov 8  }
  0x12   :  { %22 = dma.hbm_to_vmem [thread:$0]  %s588_s0, 256, %s17_s13, [#allocation3], %s512_s22, %s512_s22, %s513_s23  }
  0x13   :  { %s514_s26 = smov [#allocation5]   ;;  %s461_s30 = scalar_lea.hbm %s589_s1, 8192 }
  0x14   :  { %s28_s27 = sshll.u32 %s514_s26, 4  ;;  %p462_p8 = scmp.ne.s32.totalorder %s589_s1, %s461_s30  ;;  %s29_s27 = int_to_ptr.vmem [resolvable:$true] %s28_s27 }
  0x15   :  { %p465_p9 = scmp.lt.u32.totalorder %s461_s30, %s589_s1 }
  0x17   :  { %p467_p10 = pnand %p465_p9, %p462_p8 }
  0x19   :  { %470 = shalt.err (!%p467_p10)
}
  0x1a   :  { %s471_s8 = scalar_lea.vmem %s29_s27, 8192  ;;  %p476_p12 = scmp.lt.s32.totalorder %s29_s27, %s29_s27 }
  0x1b   :  { %p472_p11 = scmp.ne.s32.totalorder %s29_s27, %s471_s8  ;;  %p477_p13 = scmp.lt.s32.totalorder %s471_s8, %s471_s8 }
  0x1d   :  { %p478_p0 = por %p477_p13, %p476_p12 }
  0x1f   :  { %p479_p1 = pnand %p478_p0, %p472_p11 }
  0x21   :  { %482 = shalt.err (!%p479_p1)
}
  0x22   :  { %s515_s0 = smov 512   ;;  %s516_s9 = smov 32  }
  0x23   :  { %34 = dma.hbm_to_vmem [thread:$0]  %s589_s1, 8192, %s29_s27, [#allocation6], %s515_s0, %s515_s0, %s516_s9  }
  0x24   :  { %505 = dma.done.wait [#allocation3], 256  }
  0x25   :  { %506 = vsyncadd [#allocation3], 4294967040 }
  0x26   :  { %507 = dma.done.wait [#allocation6], 8192  }
  0x27   :  { %508 = vsyncadd [#allocation6], 4294959104  ;;  %v517_v0 = vmov 0.0   ;;  %v46_v1 = vld [vmem:[#allocation5 + $0x8] sm:$0xff]  ;;  %v48_v3 = vld [vmem:[#allocation5 + $0x18] sm:$0xff] }
  0x28   :  { %195 = vmatprep.mubr.f32.mxu0 %v517_v0  ;;  %272 = vmatprep.mubr.f32.mxu1 %v517_v0  ;;  %v50_v2 = vld [vmem:[#allocation5 + $0x28] sm:$0xff]  ;;  %v52_v5 = vld [vmem:[#allocation5 + $0x38] sm:$0xff]  ;;  %v45_v6 = vld [vmem:[#allocation5] sm:$0xff] }
  0x29   :  { %v351_v4 = vpack.c.bf16 %v50_v2, %v46_v1  ;;  %v49_v7 = vld [vmem:[#allocation5 + $0x20] sm:$0xff]  ;;  %v383_v8 = vpack.c.bf16 %v52_v5, %v48_v3  ;;  %v47_v10 = vld [vmem:[#allocation5 + $0x10] sm:$0xff]  ;;  %v54_v12 = vld [vmem:[#allocation5 + $0x48] sm:$0xff] }
  0x2a   :  { %v353_v9 = vpack.c.bf16 %v49_v7, %v45_v6  ;;  %v51_v11 = vld [vmem:[#allocation5 + $0x30] sm:$0xff]  ;;  %v58_v14 = vld [vmem:[#allocation5 + $0x68] sm:$0xff]  ;;  %v56_v15 = vld [vmem:[#allocation5 + $0x58] sm:$0xff] }
  0x2b   :  { %352 = vmatprep.subr.bf16.mxu0 %v351_v4  ;;  %v385_v13 = vpack.c.bf16 %v51_v11, %v47_v10  ;;  %v60_v16 = vld [vmem:[#allocation5 + $0x78] sm:$0xff]  ;;  %384 = vmatprep.subr.bf16.mxu1 %v383_v8  ;;  %v355_v17 = vpack.c.bf16 %v58_v14, %v54_v12  ;;  %v53_v19 = vld [vmem:[#allocation5 + $0x40] sm:$0xff]  ;;  %v55_v21 = vld [vmem:[#allocation5 + $0x50] sm:$0xff] }
  0x2c   :  { %354 = vmatpush1.bf16.msra.mxu0 %v353_v9  ;;  %v387_v18 = vpack.c.bf16 %v60_v16, %v56_v15  ;;  %v57_v20 = vld [vmem:[#allocation5 + $0x60] sm:$0xff]  ;;  %v59_v23 = vld [vmem:[#allocation5 + $0x70] sm:$0xff]  ;;  %v62_v24 = vld [vmem:[#allocation5 + $0x88] sm:$0xff] }
  0x2d   :  { %386 = vmatpush1.bf16.msra.mxu1 %v385_v13  ;;  %v357_v22 = vpack.c.bf16 %v57_v20, %v53_v19  ;;  %v66_v25 = vld [vmem:[#allocation5 + $0xa8] sm:$0xff]  ;;  %356 = vmatprep.subr.bf16.mxu0 %v355_v17  ;;  %v389_v26 = vpack.c.bf16 %v59_v23, %v55_v21  ;;  %v64_v28 = vld [vmem:[#allocation5 + $0x98] sm:$0xff]  ;;  %v61_v30 = vld [vmem:[#allocation5 + $0x80] sm:$0xff] }
  0x2e   :  { %388 = vmatprep.subr.bf16.mxu1 %v387_v18  ;;  %v359_v27 = vpack.c.bf16 %v66_v25, %v62_v24  ;;  %v68_v29 = vld [vmem:[#allocation5 + $0xb8] sm:$0xff]  ;;  %v65_v32 = vld [vmem:[#allocation5 + $0xa0] sm:$0xff]  ;;  %v63_v33 = vld [vmem:[#allocation5 + $0x90] sm:$0xff] }
  0x2f   :  { %v391_v31 = vpack.c.bf16 %v68_v29, %v64_v28  ;;  %v67_v34 = vld [vmem:[#allocation5 + $0xb0] sm:$0xff]  ;;  %v361_v35 = vpack.c.bf16 %v65_v32, %v61_v30  ;;  %v70_v36 = vld [vmem:[#allocation5 + $0xc8] sm:$0xff]  ;;  %v72_v38 = vld [vmem:[#allocation5 + $0xd8] sm:$0xff] }
  0x30   :  { %358 = vmatpush1.bf16.msra.mxu0 %v357_v22  ;;  %v74_v37 = vld [vmem:[#allocation5 + $0xe8] sm:$0xff]  ;;  %v393_v39 = vpack.c.bf16 %v67_v34, %v63_v33  ;;  %v76_v41 = vld [vmem:[#allocation5 + $0xf8] sm:$0xff]  ;;  %v69_v42 = vld [vmem:[#allocation5 + $0xc0] sm:$0xff] }
  0x31   :  { %390 = vmatpush1.bf16.msra.mxu1 %v389_v26  ;;  %360 = vmatprep.subr.bf16.mxu0 %v359_v27  ;;  %v363_v40 = vpack.c.bf16 %v74_v37, %v70_v36  ;;  %v73_v43 = vld [vmem:[#allocation5 + $0xe0] sm:$0xff]  ;;  %v395_v44 = vpack.c.bf16 %v76_v41, %v72_v38  ;;  %v71_v45 = vld [vmem:[#allocation5 + $0xd0] sm:$0xff]  ;;  %v78_v47 = vld [vmem:[#allocation5 + $0x108] sm:$0xff]  ;;  %v111_v36 = vlaneseq }
  0x32   :  { %392 = vmatprep.subr.bf16.mxu1 %v391_v31  ;;  %v75_v46 = vld [vmem:[#allocation5 + $0xf0] sm:$0xff]  ;;  %v82_v48 = vld [vmem:[#allocation5 + $0x128] sm:$0xff]  ;;  %v80_v49 = vld [vmem:[#allocation5 + $0x118] sm:$0xff]  ;;  %v365_v51 = vpack.c.bf16 %v73_v43, %v69_v42 }
  0x33   :  { %v84_v50 = vld [vmem:[#allocation5 + $0x138] sm:$0xff]  ;;  %v397_v52 = vpack.c.bf16 %v75_v46, %v71_v45  ;;  %v367_v53 = vpack.c.bf16 %v82_v48, %v78_v47  ;;  %v77_v54 = vld [vmem:[#allocation5 + $0x100] sm:$0xff]  ;;  %v79_v56 = vld [vmem:[#allocation5 + $0x110] sm:$0xff]  ;;  %v112_v37 = vshrl.u32 %v111_v36, 7 }
  0x34   :  { %362 = vmatpush1.bf16.msra.mxu0 %v361_v35  ;;  %v81_v55 = vld [vmem:[#allocation5 + $0x120] sm:$0xff]  ;;  %v399_v57 = vpack.c.bf16 %v84_v50, %v80_v49  ;;  %v83_v58 = vld [vmem:[#allocation5 + $0x130] sm:$0xff]  ;;  %v86_v59 = vld [vmem:[#allocation5 + $0x148] sm:$0xff] }
  0x35   :  { %394 = vmatpush1.bf16.msra.mxu1 %v393_v39  ;;  %364 = vmatprep.subr.bf16.mxu0 %v363_v40  ;;  %v90_v60 = vld [vmem:[#allocation5 + $0x168] sm:$0xff]  ;;  %v88_v61 = vld [vmem:[#allocation5 + $0x158] sm:$0xff]  ;;  %v369_v63 = vpack.c.bf16 %v81_v55, %v77_v54  ;;  %v401_v1 = vpack.c.bf16 %v83_v58, %v79_v56  ;;  %v85_v3 = vld [vmem:[#allocation5 + $0x140] sm:$0xff]  ;;  %v113_v38 = vsub.s32 0, %v112_v37  ;;  %v121_v40 = vsub.s32 2, %v112_v37 }
  0x36   :  { %396 = vmatprep.subr.bf16.mxu1 %v395_v44  ;;  %v92_v62 = vld [vmem:[#allocation5 + $0x178] sm:$0xff]  ;;  %v371_v2 = vpack.c.bf16 %v90_v60, %v86_v59  ;;  %v89_v4 = vld [vmem:[#allocation5 + $0x160] sm:$0xff]  ;;  %v87_v5 = vld [vmem:[#allocation5 + $0x150] sm:$0xff]  ;;  %v117_v41 = vsub.s32 1, %v112_v37  ;;  %v125_v42 = vsub.s32 3, %v112_v37 }
  0x37   :  { %v403_v6 = vpack.c.bf16 %v92_v62, %v88_v61  ;;  %v91_v7 = vld [vmem:[#allocation5 + $0x170] sm:$0xff]  ;;  %v94_v8 = vld [vmem:[#allocation5 + $0x188] sm:$0xff]  ;;  %v96_v10 = vld [vmem:[#allocation5 + $0x198] sm:$0xff]  ;;  %v373_v12 = vpack.c.bf16 %v89_v4, %v85_v3 }
  0x38   :  { %366 = vmatpush1.bf16.msra.mxu0 %v365_v51  ;;  %v98_v9 = vld [vmem:[#allocation5 + $0x1a8] sm:$0xff]  ;;  %v100_v11 = vld [vmem:[#allocation5 + $0x1b8] sm:$0xff]  ;;  %v405_v13 = vpack.c.bf16 %v91_v7, %v87_v5  ;;  %v93_v15 = vld [vmem:[#allocation5 + $0x180] sm:$0xff] }
  0x39   :  { %398 = vmatpush1.bf16.msra.mxu1 %v397_v52  ;;  %368 = vmatprep.subr.bf16.mxu0 %v367_v53  ;;  %v375_v14 = vpack.c.bf16 %v98_v9, %v94_v8  ;;  %v97_v16 = vld [vmem:[#allocation5 + $0x1a0] sm:$0xff]  ;;  %v95_v17 = vld [vmem:[#allocation5 + $0x190] sm:$0xff]  ;;  %v407_v18 = vpack.c.bf16 %v100_v11, %v96_v10  ;;  %v102_v20 = vld [vmem:[#allocation5 + $0x1c8] sm:$0xff] }
  0x3a   :  { %400 = vmatprep.subr.bf16.mxu1 %v399_v57  ;;  %v99_v19 = vld [vmem:[#allocation5 + $0x1b0] sm:$0xff]  ;;  %v106_v21 = vld [vmem:[#allocation5 + $0x1e8] sm:$0xff]  ;;  %v104_v22 = vld [vmem:[#allocation5 + $0x1d8] sm:$0xff]  ;;  %v377_v24 = vpack.c.bf16 %v97_v16, %v93_v15 }
  0x3b   :  { %v108_v23 = vld [vmem:[#allocation5 + $0x1f8] sm:$0xff]  ;;  %v409_v25 = vpack.c.bf16 %v99_v19, %v95_v17  ;;  %v379_v26 = vpack.c.bf16 %v106_v21, %v102_v20  ;;  %v101_v27 = vld [vmem:[#allocation5 + $0x1c0] sm:$0xff]  ;;  %v103_v30 = vld [vmem:[#allocation5 + $0x1d0] sm:$0xff] }
  0x3c   :  { %370 = vmatpush1.bf16.msra.mxu0 %v369_v63  ;;  %v105_v28 = vld [vmem:[#allocation5 + $0x1e0] sm:$0xff]  ;;  %v411_v29 = vpack.c.bf16 %v108_v23, %v104_v22  ;;  %v107_v31 = vld [vmem:[#allocation5 + $0x1f0] sm:$0xff]  ;;  %v44_v35 = vld [vmem:[#allocation2 + $0x8] sm:$0xff] }
  0x3d   :  { %402 = vmatpush1.bf16.msra.mxu1 %v401_v1  ;;  %372 = vmatprep.subr.bf16.mxu0 %v371_v2  ;;  %v381_v32 = vpack.c.bf16 %v105_v28, %v101_v27  ;;  %v413_v33 = vpack.c.bf16 %v107_v31, %v103_v30  ;;  %v43_v34 = vld [vmem:[#allocation2] sm:$0xff] }
  0x3e   :  { %404 = vmatprep.subr.bf16.mxu1 %v403_v6  ;;  %v109_v39 = vld [vmem:[%s590_s2] sm:$0xf]  ;;  %s518_s2 = smov [#allocation7]  }
  0x3f   :  { %v114_v43 = vrot.slane %v109_v39, %v113_v38  ;;  %v122_v44 = vrot.slane %v109_v39, %v121_v40  ;;  %v118_v45 = vrot.slane %v109_v39, %v117_v41  ;;  %v126_v46 = vrot.slane %v109_v39, %v125_v42  ;;  %s338_s13 = sshll.u32 %s518_s2, 4  ;;  %s339_s13 = int_to_ptr.vmem [resolvable:$true] %s338_s13 }
  0x40   :  { %374 = vmatpush1.bf16.msra.mxu0 %v373_v12  ;;  %s483_s14 = scalar_lea.vmem %s339_s13, 1024  ;;  %p488_p3 = scmp.lt.s32.totalorder %s339_s13, %s339_s13 }
  0x41   :  { %406 = vmatpush1.bf16.msra.mxu1 %v405_v13  ;;  %376 = vmatprep.subr.bf16.mxu0 %v375_v14  ;;  %p484_p2 = scmp.ne.s32.totalorder %s339_s13, %s483_s14  ;;  %p489_p4 = scmp.lt.s32.totalorder %s483_s14, %s483_s14 }
  0x42   :  { %408 = vmatprep.subr.bf16.mxu1 %v407_v18 }
  0x43   :  { %p490_p5 = por %p489_p4, %p488_p3 }
  0x44   :  { %378 = vmatpush1.bf16.msra.mxu0 %v377_v24 }
  0x45   :  { %410 = vmatpush1.bf16.msra.mxu1 %v409_v25  ;;  %380 = vmatprep.subr.bf16.mxu0 %v379_v26  ;;  %p491_p6 = pnand %p490_p5, %p484_p2 }
  0x46   :  { %412 = vmatprep.subr.bf16.mxu1 %v411_v29 }
  0x48   :  { %382 = vmatpush1.bf16.msra.mxu0 %v381_v32 }
  0x49   :  { %414 = vmatpush1.bf16.msra.mxu1 %v413_v33 }
  0x4b   :  { %196 = vmatmul.mubr.f32.vlgmr.msra.gmra.mrb[0].mxu0 %v43_v34 }
  0x4c   :  { %273 = vmatmul.mubr.f32.vlgmr.msra.gmra.mrb[0].mxu1 %v43_v34  ;;  %201 = vmatprep.mubr.f32.mxu0 %v517_v0 }
  0x4d   :  { %278 = vmatprep.mubr.f32.mxu1 %v517_v0 }
  0x4f   :  { %202 = vmatmul.mubr.f32.gmra.mrb[2].mxu0 %v44_v35 }
  0x50   :  { %279 = vmatmul.mubr.f32.gmra.mrb[2].mxu1 %v44_v35 }
 0x11e   :  { %v197_v47 = vpop.f32.mrb[0].mxu0 }
 0x11f   :  { %v198_v48 = vadd.f32 %v197_v47, %v114_v43  ;;  %v274_v49 = vpop.f32.mrb[0].mxu1  ;;  %v199_v0 = vpop.f32.mrb[1].mxu0 }
 0x120   :  { %v275_v50 = vadd.f32 %v274_v49, %v122_v44  ;;  %v200_v51 = vadd.f32 %v199_v0, %v118_v45  ;;  %v276_v52 = vpop.f32.mrb[1].mxu1 }
 0x121   :  { %v293_v53 = vmul.f32 0.70710677, %v198_v48  ;;  %v277_v54 = vadd.f32 %v276_v52, %v126_v46  ;;  %v285_v9 = vmul.f32 0.5, %v198_v48 }
 0x122   :  { %v295_v55 = vmul.f32 0.70710677, %v275_v50  ;;  %v294_v56 = vmul.f32 0.70710677, %v200_v51  ;;  %v203_v58 = vpop.f32.mrb[2].mxu0  ;;  %v287_v12 = vmul.f32 0.5, %v275_v50 }
 0x123   :  { %423 = verf.f32 %v293_v53  ;;  %v296_v57 = vmul.f32 0.70710677, %v277_v54  ;;  %v280_v59 = vpop.f32.mrb[2].mxu1  ;;  %v204_v60 = vadd.f32 %v203_v58, %v114_v43  ;;  %v205_v62 = vpop.f32.mrb[3].mxu0  ;;  %v286_v16 = vmul.f32 0.5, %v200_v51 }
 0x124   :  { %425 = verf.f32 %v295_v55  ;;  %v281_v61 = vadd.f32 %v280_v59, %v122_v44  ;;  %v282_v63 = vpop.f32.mrb[3].mxu1  ;;  %v206_v1 = vadd.f32 %v205_v62, %v118_v45  ;;  %v288_v19 = vmul.f32 0.5, %v277_v54 }
 0x125   :  { %427 = verf.f32 %v294_v56  ;;  %v283_v2 = vadd.f32 %v282_v63, %v126_v46  ;;  %v297_v3 = vmul.f32 0.70710677, %v204_v60  ;;  %v289_v25 = vmul.f32 0.5, %v204_v60 }
 0x126   :  { %429 = verf.f32 %v296_v57  ;;  %v299_v4 = vmul.f32 0.70710677, %v281_v61  ;;  %v298_v5 = vmul.f32 0.70710677, %v206_v1  ;;  %v291_v28 = vmul.f32 0.5, %v281_v61 }
 0x127   :  { %431 = verf.f32 %v297_v3  ;;  %v300_v6 = vmul.f32 0.70710677, %v283_v2  ;;  %v290_v32 = vmul.f32 0.5, %v206_v1  ;;  %v292_v35 = vmul.f32 0.5, %v283_v2 }
 0x128   :  { %433 = verf.f32 %v299_v4 }
 0x129   :  { %435 = verf.f32 %v298_v5 }
 0x12a   :  { %437 = verf.f32 %v300_v6 }
 0x12d   :  { %v424_v7 = vpop.eup %423 }
 0x12e   :  { %v426_v8 = vpop.eup %425  ;;  %v309_v10 = vadd.f32 1.0, %v424_v7 }
 0x12f   :  { %v428_v11 = vpop.eup %427  ;;  %v311_v13 = vadd.f32 1.0, %v426_v8 }
 0x130   :  { %v430_v14 = vpop.eup %429  ;;  %v317_v15 = vmul.f32 %v309_v10, %v285_v9  ;;  %v310_v17 = vadd.f32 1.0, %v428_v11 }
 0x131   :  { %v319_v18 = vmul.f32 %v311_v13, %v287_v12  ;;  %v312_v20 = vadd.f32 1.0, %v430_v14  ;;  %v432_v21 = vpop.eup %431 }
 0x132   :  { %325 = vst [vmem:[#allocation7] sm:$0xff] %v317_v15  ;;  %v318_v22 = vmul.f32 %v310_v17, %v286_v16  ;;  %v434_v23 = vpop.eup %433  ;;  %v313_v26 = vadd.f32 1.0, %v432_v21 }
 0x133   :  { %327 = vst [vmem:[#allocation7 + $0x10] sm:$0xff] %v319_v18  ;;  %v320_v24 = vmul.f32 %v312_v20, %v288_v19  ;;  %v436_v27 = vpop.eup %435  ;;  %v315_v29 = vadd.f32 1.0, %v434_v23 }
 0x134   :  { %326 = vst [vmem:[#allocation7 + $0x8] sm:$0xff] %v318_v22  ;;  %v438_v30 = vpop.eup %437  ;;  %v321_v31 = vmul.f32 %v313_v26, %v289_v25  ;;  %v314_v33 = vadd.f32 1.0, %v436_v27 }
 0x135   :  { %328 = vst [vmem:[#allocation7 + $0x18] sm:$0xff] %v320_v24  ;;  %v323_v34 = vmul.f32 %v315_v29, %v291_v28  ;;  %v316_v36 = vadd.f32 1.0, %v438_v30 }
 0x136   :  { %329 = vst [vmem:[#allocation7 + $0x20] sm:$0xff] %v321_v31  ;;  %v322_v37 = vmul.f32 %v314_v33, %v290_v32 }
 0x137   :  { %331 = vst [vmem:[#allocation7 + $0x30] sm:$0xff] %v323_v34  ;;  %v324_v38 = vmul.f32 %v316_v36, %v292_v35 }
 0x138   :  { %330 = vst [vmem:[#allocation7 + $0x28] sm:$0xff] %v322_v37 }
 0x139   :  { %332 = vst [vmem:[#allocation7 + $0x38] sm:$0xff] %v324_v38 }
 0x13a   :  { %494 = shalt.err (!%p491_p6)
}
 0x13b   :  { %s495_s17 = scalar_lea.hbm %s591_s3, 1024 }
 0x13c   :  { %p496_p7 = scmp.ne.s32.totalorder %s591_s3, %s495_s17  ;;  %p499_p8 = scmp.lt.u32.totalorder %s495_s17, %s591_s3 }
 0x13e   :  { %p501_p9 = pnand %p499_p8, %p496_p7 }
 0x140   :  { %504 = shalt.err (!%p501_p9)
}
 0x141   :  { %344 = dma.vmem_to_hbm [thread:$0]  %s339_s13, 1024, %s591_s3, [#allocation4], %s515_s0, %s515_s0, %s516_s9  }
 0x142   :  { %509 = dma.done.wait [#allocation4], 1024  }
 0x143   :  { %510 = vsyncadd [#allocation4], 4294966272 }
 0x144   :  { %348 = vsyncpa [#allocation3], 1 }
 0x145   :  { %349 = vsyncpa [#allocation6], 1 }
 0x146   :  { %350 = vsyncpa [#allocation4], 1 }

</bundles_post_ra>
